<compile_context>
chip_gen: v6e
topology: v6e:2x2x1
jax: 0.10.0
libtpu: 0.0.40
codegen_flags: <defaults>
</compile_context>

<pallas_src>
import functools

import numpy as np
import jax
import jax.numpy as jnp
from jax import lax
from jax.experimental import pallas as pl
from jax.experimental.pallas import tpu as pltpu


def _round_up(x, m):
    return ((x + m - 1) // m) * m


# ------------------------------------------------------------------
# Hoisted input-gate precompute: gx = x @ W_ih + (b_ih + b_hh), both directions
# from one x tile (shared DMA). Row-tiled, parallel.
# ------------------------------------------------------------------
def _in_gates_kernel(x_ref, wf_ref, bf_ref, wb_ref, bb_ref, gf_ref, gb_ref):
    x = x_ref[...]
    gf_ref[...] = jnp.dot(x, wf_ref[...],
                          preferred_element_type=jnp.float32) + bf_ref[...]
    gb_ref[...] = jnp.dot(x, wb_ref[...],
                          preferred_element_type=jnp.float32) + bb_ref[...]


def input_gates(x2d, wih_f, b_f, wih_b, b_b, *, row_tile=256):
    N, Din = x2d.shape
    G = wih_f.shape[1]
    tn = min(row_tile, _round_up(N, 8))
    Np = _round_up(N, tn)
    if Np != N:
        x2d = jnp.pad(x2d, ((0, Np - N), (0, 0)))
    gf, gb = pl.pallas_call(
        _in_gates_kernel,
        out_shape=(jax.ShapeDtypeStruct((Np, G), jnp.float32),
                   jax.ShapeDtypeStruct((Np, G), jnp.float32)),
        grid=(Np // tn,),
        in_specs=[pl.BlockSpec((tn, Din), lambda i: (i, 0)),
                  pl.BlockSpec((Din, G), lambda i: (0, 0)),
                  pl.BlockSpec((1, G), lambda i: (0, 0)),
                  pl.BlockSpec((Din, G), lambda i: (0, 0)),
                  pl.BlockSpec((1, G), lambda i: (0, 0))],
        out_specs=(pl.BlockSpec((tn, G), lambda i: (i, 0)),
                   pl.BlockSpec((tn, G), lambda i: (i, 0))),
        compiler_params=pltpu.CompilerParams(
            dimension_semantics=("parallel",)),
    )(x2d, wih_f, b_f, wih_b, b_b)
    if Np != N:
        gf = gf[:N]
        gb = gb[:N]
    return gf, gb


# ------------------------------------------------------------------
# Fused bidirectional LSTM recurrence. Grid over time CHUNKS (sequential,
# "arbitrary"), unrolled inner loop of tc steps, h@W_hh only per step
# (input gates precomputed). Gate order i, f, g, o (PyTorch).
# ------------------------------------------------------------------
def _bilstm_kernel(minlen_ref, lens_ref, gxf_ref, gxb_ref, whhf_ref, whhb_ref,
                   yf_ref, yb_ref, hn_ref, cn_ref,
                   hf, cf, hb, cb, *, cdim, tc, t_total):
    c = pl.program_id(0)
    nchunks = pl.num_programs(0)
    minlen = minlen_ref[0]                       # SMEM scalar: min(ilens)

    @pl.when(c == 0)
    def _():
        hf[...] = jnp.zeros_like(hf)
        cf[...] = jnp.zeros_like(cf)
        hb[...] = jnp.zeros_like(hb)
        cb[...] = jnp.zeros_like(cb)

    whh_f = whhf_ref[...]
    whh_b = whhb_ref[...]
    lens = lens_ref[...]                          # (B, 1) int32 in VMEM

    def cell(gates, c_prev):
        i_g = jax.nn.sigmoid(gates[:, 0 * cdim:1 * cdim])
        f_g = jax.nn.sigmoid(gates[:, 1 * cdim:2 * cdim])
        g_g = jnp.tanh(gates[:, 2 * cdim:3 * cdim])
        o_g = jax.nn.sigmoid(gates[:, 3 * cdim:4 * cdim])
        c_new = f_g * c_prev + i_g * g_g
        h_new = o_g * jnp.tanh(c_new)
        return h_new, c_new

    def step(s, carry):
        t_f = c * tc + s                          # global forward time
        t_b = (t_total - 1) - t_f                 # global backward time
        sb = tc - 1 - s                           # local index in backward block

        # ---------------- forward direction ----------------
        h_prev = hf[...]
        c_prev = cf[...]
        gates = gxf_ref[s] + jnp.dot(h_prev, whh_f,
                                     preferred_element_type=jnp.float32)
        h_new, c_new = cell(gates, c_prev)

        @pl.when(t_f < minlen)                    # all rows valid: no masking
        def _():
            hf[...] = h_new
            cf[...] = c_new
            yf_ref[s] = h_new

        @pl.when(t_f >= minlen)                   # packed-sequence semantics
        def _():
            valid = t_f < lens
            hf[...] = jnp.where(valid, h_new, h_prev)
            cf[...] = jnp.where(valid, c_new, c_prev)
            yf_ref[s] = jnp.where(valid, h_new, jnp.zeros_like(h_new))

        # ---------------- backward direction ----------------
        hb_prev = hb[...]
        cb_prev = cb[...]
        gates_b = gxb_ref[sb] + jnp.dot(hb_prev, whh_b,
                                        preferred_element_type=jnp.float32)
        hb_new, cb_new = cell(gates_b, cb_prev)

        @pl.when(t_b < minlen)
        def _():
            hb[...] = hb_new
            cb[...] = cb_new
            yb_ref[sb] = hb_new

        @pl.when(t_b >= minlen)
        def _():
            valid_b = t_b < lens
            hb[...] = jnp.where(valid_b, hb_new, hb_prev)
            cb[...] = jnp.where(valid_b, cb_new, cb_prev)
            yb_ref[sb] = jnp.where(valid_b, hb_new, jnp.zeros_like(hb_new))

        return carry

    lax.fori_loop(0, tc, step, 0, unroll=True)

    @pl.when(c == nchunks - 1)                    # finalize states only once
    def _():
        hn_ref[0] = hf[...]
        hn_ref[1] = hb[...]
        cn_ref[0] = cf[...]
        cn_ref[1] = cb[...]


def bilstm(gxf, gxb, whh_f, whh_b, lens_pad, minlen, *, cdim, time_chunk=8):
    T, Bp, G = gxf.shape
    tc = min(time_chunk, T)
    Tp = _round_up(T, tc)
    if Tp != T:
        pad = ((0, Tp - T), (0, 0), (0, 0))
        gxf = jnp.pad(gxf, pad)
        gxb = jnp.pad(gxb, pad)
    nchunks = Tp // tc
    lens2d = lens_pad.reshape(Bp, 1).astype(jnp.int32)
    minlen1 = jnp.reshape(minlen, (1,)).astype(jnp.int32)

    kernel = functools.partial(_bilstm_kernel, cdim=cdim, tc=tc, t_total=Tp)
    grid_spec = pltpu.PrefetchScalarGridSpec(
        num_scalar_prefetch=1,                    # min(ilens) -> SMEM
        grid=(nchunks,),
        in_specs=[
            pl.BlockSpec((Bp, 1), lambda c, ml: (0, 0)),
            pl.BlockSpec((tc, Bp, G), lambda c, ml: (c, 0, 0)),
            pl.BlockSpec((tc, Bp, G),
                         lambda c, ml, n=nchunks: (n - 1 - c, 0, 0)),
            pl.BlockSpec((cdim, G), lambda c, ml: (0, 0)),
            pl.BlockSpec((cdim, G), lambda c, ml: (0, 0)),
        ],
        out_specs=(
            pl.BlockSpec((tc, Bp, cdim), lambda c, ml: (c, 0, 0)),
            pl.BlockSpec((tc, Bp, cdim),
                         lambda c, ml, n=nchunks: (n - 1 - c, 0, 0)),
            pl.BlockSpec((2, Bp, cdim), lambda c, ml: (0, 0, 0)),
            pl.BlockSpec((2, Bp, cdim), lambda c, ml: (0, 0, 0)),
        ),
        scratch_shapes=[pltpu.VMEM((Bp, cdim), jnp.float32)
                        for _ in range(4)],
    )
    y_f, y_b, hn, cn = pl.pallas_call(
        kernel,
        out_shape=(jax.ShapeDtypeStruct((Tp, Bp, cdim), jnp.float32),
                   jax.ShapeDtypeStruct((Tp, Bp, cdim), jnp.float32),
                   jax.ShapeDtypeStruct((2, Bp, cdim), jnp.float32),
                   jax.ShapeDtypeStruct((2, Bp, cdim), jnp.float32)),
        grid_spec=grid_spec,
        # Recurrence: this axis must stay "arbitrary" (state carried in scratch).
        compiler_params=pltpu.CompilerParams(
            dimension_semantics=("arbitrary",)),
    )(minlen1, lens2d, gxf, gxb, whh_f, whh_b)
    if Tp != T:
        y_f = y_f[:T]
        y_b = y_b[:T]
    return y_f, y_b, hn, cn


# ------------------------------------------------------------------
# Projection with fused fwd/bwd concat: y_f @ Wp_f + y_b @ Wp_b + b (+ tanh).
# Row-tiled, parallel. Avoids materializing the (T, B, 2C) concat in HBM.
# ------------------------------------------------------------------
def _proj2_kernel(yf_ref, yb_ref, wf_ref, wb_ref, b_ref, o_ref, *, apply_tanh):
    acc = (jnp.dot(yf_ref[...], wf_ref[...], preferred_element_type=jnp.float32)
           + jnp.dot(yb_ref[...], wb_ref[...], preferred_element_type=jnp.float32)
           + b_ref[...])
    if apply_tanh:
        acc = jnp.tanh(acc)
    o_ref[...] = acc


def projection_bidir(yf2d, yb2d, wp_f, wp_b, b2d, *, apply_tanh, row_tile=256):
    N, C = yf2d.shape
    H = wp_f.shape[1]
    tn = min(row_tile, _round_up(N, 8))
    Np = _round_up(N, tn)
    if Np != N:
        pad = ((0, Np - N), (0, 0))
        yf2d = jnp.pad(yf2d, pad)
        yb2d = jnp.pad(yb2d, pad)
    out = pl.pallas_call(
        functools.partial(_proj2_kernel, apply_tanh=apply_tanh),
        out_shape=jax.ShapeDtypeStruct((Np, H), jnp.float32),
        grid=(Np // tn,),
        in_specs=[pl.BlockSpec((tn, C), lambda i: (i, 0)),
                  pl.BlockSpec((tn, C), lambda i: (i, 0)),
                  pl.BlockSpec((C, H), lambda i: (0, 0)),
                  pl.BlockSpec((C, H), lambda i: (0, 0)),
                  pl.BlockSpec((1, H), lambda i: (0, 0))],
        out_specs=pl.BlockSpec((tn, H), lambda i: (i, 0)),
        compiler_params=pltpu.CompilerParams(
            dimension_semantics=("parallel",)),
    )(yf2d, yb2d, wp_f, wp_b, b2d)
    return out[:N] if Np != N else out


# ------------------------------------------------------------------
# Parameter init (PyTorch-like uniform(-1/sqrt(C), 1/sqrt(C))).
# ------------------------------------------------------------------
def init_rnnp_params(key, idim, elayers, cdim, hdim):
    params = []
    scale = 1.0 / np.sqrt(cdim)

    def u(k, shape):
        return jax.random.uniform(k, shape, jnp.float32, -scale, scale)

    for layer in range(elayers):
        din = idim if layer == 0 else hdim
        key, *ks = jax.random.split(key, 12)
        params.append(dict(
            wih_f=u(ks[0], (din, 4 * cdim)),
            whh_f=u(ks[1], (cdim, 4 * cdim)),
            b_f=u(ks[2], (1, 4 * cdim)) + u(ks[3], (1, 4 * cdim)),   # b_ih + b_hh
            wih_b=u(ks[4], (din, 4 * cdim)),
            whh_b=u(ks[5], (cdim, 4 * cdim)),
            b_b=u(ks[6], (1, 4 * cdim)) + u(ks[7], (1, 4 * cdim)),
            wp_f=u(ks[8], (cdim, hdim)),          # Linear(2C->H) split per dir
            wp_b=u(ks[9], (cdim, hdim)),
            b_proj=u(ks[10], (1, hdim)),
        ))
    return params


# ------------------------------------------------------------------
# RNNP forward (time-major internally; eval mode: dropout == identity).
# ------------------------------------------------------------------
def rnnp_forward_time_major(x_tbd, lens_real, lens_pad, params, subsample,
                            *, cdim, hdim, time_chunk=8):
    elayers = len(params)
    states = []
    for layer in range(elayers):
        p = params[layer]
        T, Bp, Din = x_tbd.shape

        # 1) hoisted input projection (both directions, one big matmul pass)
        gf, gb = input_gates(x_tbd.reshape(T * Bp, Din),
                             p['wih_f'], p['b_f'], p['wih_b'], p['b_b'])
        gf = gf.reshape(T, Bp, 4 * cdim)
        gb = gb.reshape(T, Bp, 4 * cdim)

        # 2) fused bidirectional recurrence
        y_f, y_b, hn, cn = bilstm(gf, gb, p['whh_f'], p['whh_b'],
                                  lens_pad, jnp.min(lens_real),
                                  cdim=cdim, time_chunk=time_chunk)
        states.append((hn, cn))                   # (2, B, C) h_n / c_n

        # 3) subsample in time (matches ys_pad[:, ::sub])
        sub = int(subsample[layer + 1])
        if sub > 1:
            y_f = y_f[::sub]
            y_b = y_b[::sub]
            lens_real = (lens_real + 1) // sub
            lens_pad = (lens_pad + 1) // sub

        # 4) projection Linear(2C->H); tanh on non-final layers (dropout=eval id)
        Tsub = y_f.shape[0]
        proj = projection_bidir(y_f.reshape(Tsub * Bp, cdim),
                                y_b.reshape(Tsub * Bp, cdim),
                                p['wp_f'], p['wp_b'], p['b_proj'],
                                apply_tanh=(layer < elayers - 1))
        x_tbd = proj.reshape(Tsub, Bp, hdim)
    return x_tbd, lens_real, states


def encoder_forward(xs_pad, ilens, params, subsample, *, cdim, hdim,
                    time_chunk=8):
    # xs_pad: (B, Tmax, idim) f32, ilens: (B,) int32 with max(ilens) == Tmax
    B, Tmax, idim = xs_pad.shape
    Bp = _round_up(B, 8)                          # sublane-align the batch
    lens_real = ilens.astype(jnp.int32)
    if Bp != B:
        xs_pad = jnp.pad(xs_pad, ((0, Bp - B), (0, 0), (0, 0)))
        lens_pad = jnp.pad(lens_real, (0, Bp - B))
    else:
        lens_pad = lens_real

    x_tbd = jnp.transpose(xs_pad, (1, 0, 2))      # time-major once
    x_tbd, olens, states = rnnp_forward_time_major(
        x_tbd, lens_real, lens_pad, params, subsample,
        cdim=cdim, hdim=hdim, time_chunk=time_chunk)
    out = jnp.transpose(x_tbd, (1, 0, 2))[:B]     # back to (B, T, hdim)

    # Encoder-level masked_fill(make_pad_mask(olens), 0.0)
    Tout = out.shape[1]
    mask = (jnp.arange(Tout, dtype=jnp.int32)[None, :, None]
            < olens[:, None, None])
    out = jnp.where(mask, out, 0.0)

    states = [(hn[:, :B], cn[:, :B]) for hn, cn in states]
    return out, olens, states


if __name__ == "__main__":
    B, Tmax, idim, cdim, hdim, elayers = 2, 8, 16, 32, 32, 2
    subsample = np.array([1, 1, 2])               # subsample[layer + 1] per layer

    key = jax.random.PRNGKey(0)
    kx, kp = jax.random.split(key)
    xs_pad = jax.random.normal(kx, (B, Tmax, idim), jnp.float32)
    ilens = jnp.array([8, 6], dtype=jnp.int32)    # max(ilens) == Tmax

    params = init_rnnp_params(kp, idim, elayers, cdim, hdim)
    out, olens, states = encoder_forward(xs_pad, ilens, params, subsample,
                                         cdim=cdim, hdim=hdim)
    jax.block_until_ready(out)
    jax.block_until_ready(olens)
    for hn, cn in states:
        jax.block_until_ready(hn)
        jax.block_until_ready(cn)
    assert out.shape == (B, 4, hdim), out.shape   # T: 8 -> (sub=2) -> 4
    assert all(hn.shape == (2, B, cdim) for hn, _ in states)
    print("KERNEL_OK")
</pallas_src>

<mosaic_0001>
module attributes {stable_mosaic.version = 11 : i64} {
  func.func @_in_gates_kernel(%arg0: i32, %arg1: memref<64x16xf32, #tpu.memory_space<vmem>>, %arg2: memref<16x128xf32, #tpu.memory_space<vmem>>, %arg3: memref<1x128xf32, #tpu.memory_space<vmem>>, %arg4: memref<16x128xf32, #tpu.memory_space<vmem>>, %arg5: memref<1x128xf32, #tpu.memory_space<vmem>>, %arg6: memref<64x128xf32, #tpu.memory_space<vmem>>, %arg7: memref<64x128xf32, #tpu.memory_space<vmem>>) attributes {dimension_semantics = [#tpu.dimension_semantics<parallel>], iteration_bounds = array<i64: 1>, scalar_prefetch = 0 : i64, scratch_operands = 0 : i64, tpu.core_type = #tpu.core_type<tc>, window_params = [{transform_indices = @transform_0, window_bounds = array<i64: 64, 16>}, {pipeline_mode = #tpu.pipeline_mode<synchronous>, transform_indices = @transform_1, window_bounds = array<i64: 16, 128>}, {pipeline_mode = #tpu.pipeline_mode<synchronous>, transform_indices = @transform_2, window_bounds = array<i64: 1, 128>}, {pipeline_mode = #tpu.pipeline_mode<synchronous>, transform_indices = @transform_3, window_bounds = array<i64: 16, 128>}, {pipeline_mode = #tpu.pipeline_mode<synchronous>, transform_indices = @transform_4, window_bounds = array<i64: 1, 128>}, {transform_indices = @transform_5, window_bounds = array<i64: 64, 128>}, {transform_indices = @transform_6, window_bounds = array<i64: 64, 128>}]} {
    %c0 = arith.constant 0 : index
    %c0_0 = arith.constant 0 : index
    %0 = vector.load %arg1[%c0, %c0_0] : memref<64x16xf32, #tpu.memory_space<vmem>>, vector<64x16xf32>
    %c0_1 = arith.constant 0 : index
    %c0_2 = arith.constant 0 : index
    %1 = vector.load %arg2[%c0_1, %c0_2] : memref<16x128xf32, #tpu.memory_space<vmem>>, vector<16x128xf32>
    %cst = arith.constant dense<0.000000e+00> : vector<64x128xf32>
    %2 = tpu.matmul %0, %1, %cst {dimension_numbers = #tpu.dot_dimension_numbers<[1], [0], [0], [1], [0, 0, 1, 1], [], []>} : vector<64x16xf32>, vector<16x128xf32>, vector<64x128xf32> -> vector<64x128xf32>
    %c0_3 = arith.constant 0 : index
    %c0_4 = arith.constant 0 : index
    %3 = vector.load %arg3[%c0_3, %c0_4] : memref<1x128xf32, #tpu.memory_space<vmem>>, vector<1x128xf32>
    %4 = vector.broadcast %3 : vector<1x128xf32> to vector<64x128xf32>
    %5 = arith.addf %2, %4 : vector<64x128xf32>
    %c0_5 = arith.constant 0 : index
    %c0_6 = arith.constant 0 : index
    %6 = vector.load %arg6[%c0_5, %c0_6] : memref<64x128xf32, #tpu.memory_space<vmem>>, vector<64x128xf32>
    tpu.vector_store %arg6[%c0_5, %c0_6], %5 {strides = array<i32>} : memref<64x128xf32, #tpu.memory_space<vmem>>, vector<64x128xf32>,
    %c0_7 = arith.constant 0 : index
    %c0_8 = arith.constant 0 : index
    %7 = vector.load %arg4[%c0_7, %c0_8] : memref<16x128xf32, #tpu.memory_space<vmem>>, vector<16x128xf32>
    %cst_9 = arith.constant dense<0.000000e+00> : vector<64x128xf32>
    %8 = tpu.matmul %0, %7, %cst_9 {dimension_numbers = #tpu.dot_dimension_numbers<[1], [0], [0], [1], [0, 0, 1, 1], [], []>} : vector<64x16xf32>, vector<16x128xf32>, vector<64x128xf32> -> vector<64x128xf32>
    %c0_10 = arith.constant 0 : index
    %c0_11 = arith.constant 0 : index
    %9 = vector.load %arg5[%c0_10, %c0_11] : memref<1x128xf32, #tpu.memory_space<vmem>>, vector<1x128xf32>
    %10 = vector.broadcast %9 : vector<1x128xf32> to vector<64x128xf32>
    %11 = arith.addf %8, %10 : vector<64x128xf32>
    %c0_12 = arith.constant 0 : index
    %c0_13 = arith.constant 0 : index
    %12 = vector.load %arg7[%c0_12, %c0_13] : memref<64x128xf32, #tpu.memory_space<vmem>>, vector<64x128xf32>
    tpu.vector_store %arg7[%c0_12, %c0_13], %11 {strides = array<i32>} : memref<64x128xf32, #tpu.memory_space<vmem>>, vector<64x128xf32>,
    return
  }
  func.func @transform_0(%arg0: i32) -> (i32, i32) {
    %c0_i32 = arith.constant 0 : i32
    %c0_i32_0 = arith.constant 0 : i32
    return %arg0, %c0_i32 : i32, i32
  }
  func.func @transform_1(%arg0: i32) -> (i32, i32) {
    %c0_i32 = arith.constant 0 : i32
    %c0_i32_0 = arith.constant 0 : i32
    %c0_i32_1 = arith.constant 0 : i32
    return %c0_i32, %c0_i32_0 : i32, i32
  }
  func.func @transform_2(%arg0: i32) -> (i32, i32) {
    %c0_i32 = arith.constant 0 : i32
    %c0_i32_0 = arith.constant 0 : i32
    %c0_i32_1 = arith.constant 0 : i32
    return %c0_i32, %c0_i32_0 : i32, i32
  }
  func.func @transform_3(%arg0: i32) -> (i32, i32) {
    %c0_i32 = arith.constant 0 : i32
    %c0_i32_0 = arith.constant 0 : i32
    %c0_i32_1 = arith.constant 0 : i32
    return %c0_i32, %c0_i32_0 : i32, i32
  }
  func.func @transform_4(%arg0: i32) -> (i32, i32) {
    %c0_i32 = arith.constant 0 : i32
    %c0_i32_0 = arith.constant 0 : i32
    %c0_i32_1 = arith.constant 0 : i32
    return %c0_i32, %c0_i32_0 : i32, i32
  }
  func.func @transform_5(%arg0: i32) -> (i32, i32) {
    %c0_i32 = arith.constant 0 : i32
    %c0_i32_0 = arith.constant 0 : i32
    return %arg0, %c0_i32 : i32, i32
  }
  func.func @transform_6(%arg0: i32) -> (i32, i32) {
    %c0_i32 = arith.constant 0 : i32
    %c0_i32_0 = arith.constant 0 : i32
    return %arg0, %c0_i32 : i32, i32
  }
}

</mosaic_0001>

<bundles_post_ra>
// kernel: tpu_custom_call.1
= control target key start
LH: loop header
LB: loop body
LE: loop exit
PB: predicated region body
PF: predicated region fallthrough
CT: control target
= control target key end

     0   :  { %12 = vsyncpa [#allocation3], 0  ;;  %vm41_vm0 = vcmask 130048   ;;  %s554_s0 = inlined_call_operand.vmem [shape: f32[64,16], index: 0, kind: input, shape index: {}]   ;;  %s555_s1 = inlined_call_operand.vmem [shape: f32[16,128], index: 1, kind: input, shape index: {}]   ;;  %s556_s2 = inlined_call_operand.vmem [shape: f32[1,128], index: 2, kind: input, shape index: {}]   ;;  %s557_s3 = inlined_call_operand.vmem [shape: f32[16,128], index: 3, kind: input, shape index: {}]   ;;  %s558_s4 = inlined_call_operand.vmem [shape: f32[1,128], index: 4, kind: input, shape index: {}]   ;;  %s559_s5 = inlined_call_operand.hbm [shape: f32[64,128], index: 5, kind: output, shape index: {0}]   ;;  %s560_s6 = inlined_call_operand.hbm [shape: f32[64,128], index: 6, kind: output, shape index: {1}]  }
   0x1   :  { %v33_v0 = vld [vmem:[%s555_s1 + $0x8] sm:$0xff]  ;;  %v32_v2 = vld [vmem:[%s555_s1] sm:$0xff]  ;;  %v26_v6 = vld [vmem:[%s554_s0 + $0x10] sm:$0xff] }
   0x2   :  { %v180_v1 = vld [vmem:[%s557_s3 + $0x8] sm:$0xff]  ;;  %371 = vmatprep.subr.mxu0 %v33_v0  ;;  %v179_v3 = vld [vmem:[%s557_s3] sm:$0xff] }
   0x3   :  { %387 = vmatprep.subr.mxu1 %v180_v1  ;;  %v24_v4 = vld [vmem:[%s554_s0] sm:$0xff]  ;;  %372 = vmatpush3.msra.mxu0 %v33_v0  ;;  %v25_v5 = vld [vmem:[%s554_s0 + $0x8] sm:$0xff] }
   0x4   :  { %388 = vmatpush3.msra.mxu1 %v180_v1  ;;  %373 = vmatprep.subr.mxu0 %v32_v2 }
   0x5   :  { %389 = vmatprep.subr.mxu1 %v179_v3  ;;  %374 = vmatpush3.msra.mxu0 %v32_v2 }
   0x6   :  { %375 = vmatprep.mubr.msk.f32.mxu0 %vm41_vm0, %v24_v4 }
   0x7   :  { %13 = vsyncpa [#allocation5], 0  ;;  %390 = vmatpush3.msra.mxu1 %v179_v3  ;;  %391 = vmatprep.mubr.msk.f32.mxu1 %vm41_vm0, %v24_v4  ;;  %v27_v7 = vld [vmem:[%s554_s0 + $0x18] sm:$0xff]  ;;  %v28_v8 = vld [vmem:[%s554_s0 + $0x20] sm:$0xff] }
   0x8   :  { %376 = vmatmul.mubr.msk.f32.vlgmr.msra.gmra.mxu0 %vm41_vm0, %v25_v5  ;;  %392 = vmatmul.mubr.msk.f32.vlgmr.msra.gmra.mxu1 %vm41_vm0, %v25_v5  ;;  %v29_v9 = vld [vmem:[%s554_s0 + $0x28] sm:$0xff]  ;;  %v30_v10 = vld [vmem:[%s554_s0 + $0x30] sm:$0xff]  ;;  %v31_v11 = vld [vmem:[%s554_s0 + $0x38] sm:$0xff]  ;;  %s451_s0 = smov [#allocation2]  }
   0x9   :  { %378 = vmatprep.mubr.msk.f32.mxu0 %vm41_vm0, %v26_v6  ;;  %394 = vmatprep.mubr.msk.f32.mxu1 %vm41_vm0, %v26_v6  ;;  %v333_v12 = vld [vmem:[%s556_s2] ss:$0 sm:$0xff]  ;;  %s306_s2 = sshll.u32 %s451_s0, 4  ;;  %s307_s2 = int_to_ptr.vmem [resolvable:$true] %s306_s2 }
   0xa   :  { %v342_v13 = vld [vmem:[%s558_s4] ss:$0 sm:$0xff]  ;;  %s452_s4 = smov [#allocation4]   ;;  %s407_s24 = scalar_lea.vmem %s307_s2, 1024 }
   0xb   :  { %s318_s23 = sshll.u32 %s452_s4, 4  ;;  %p408_p0 = scmp.ne.s32.totalorder %s307_s2, %s407_s24  ;;  %s319_s23 = int_to_ptr.vmem [resolvable:$true] %s318_s23 }
   0xc   :  { %379 = vmatmul.mubr.msk.f32.gmra.mxu0 %vm41_vm0, %v27_v7  ;;  %395 = vmatmul.mubr.msk.f32.gmra.mxu1 %vm41_vm0, %v27_v7  ;;  %p412_p1 = scmp.lt.s32.totalorder %s307_s2, %s307_s2  ;;  %p413_p2 = scmp.lt.s32.totalorder %s407_s24, %s407_s24 }
   0xd   :  { %381 = vmatprep.mubr.msk.f32.mxu0 %vm41_vm0, %v28_v8  ;;  %397 = vmatprep.mubr.msk.f32.mxu1 %vm41_vm0, %v28_v8 }
   0xe   :  { %p414_p3 = por %p413_p2, %p412_p1 }
  0x10   :  { %382 = vmatmul.mubr.msk.f32.gmra.mxu0 %vm41_vm0, %v29_v9  ;;  %398 = vmatmul.mubr.msk.f32.gmra.mxu1 %vm41_vm0, %v29_v9  ;;  %p415_p4 = pnand %p414_p3, %p408_p0 }
  0x11   :  { %384 = vmatprep.mubr.msk.f32.mxu0 %vm41_vm0, %v30_v10  ;;  %400 = vmatprep.mubr.msk.f32.mxu1 %vm41_vm0, %v30_v10 }
  0x14   :  { %385 = vmatmul.mubr.msk.f32.gmra.mxu0 %vm41_vm0, %v31_v11  ;;  %401 = vmatmul.mubr.msk.f32.gmra.mxu1 %vm41_vm0, %v31_v11 }
  0xc8   :  { %v377_v14 = vpop.f32.mrf.mxu0  ;;  %v393_v15 = vpop.f32.mrf.mxu1 }
  0xc9   :  { %v138_v16 = vadd.f32 %v377_v14, %v333_v12  ;;  %v260_v17 = vadd.f32 %v393_v15, %v342_v13 }
  0xca   :  { %v132_v18 = vpop.f32.mrf.mxu0  ;;  %v254_v19 = vpop.f32.mrf.mxu1 }
  0xcb   :  { %172 = vst [vmem:[#allocation2 + $0x8] sm:$0xff] %v138_v16  ;;  %294 = vst [vmem:[#allocation4 + $0x8] sm:$0xff] %v260_v17  ;;  %v133_v20 = vadd.f32 %v333_v12, %v132_v18  ;;  %v255_v21 = vadd.f32 %v342_v13, %v254_v19 }
  0xcc   :  { %v380_v22 = vpop.f32.mrf.mxu0  ;;  %v396_v23 = vpop.f32.mrf.mxu1 }
  0xcd   :  { %171 = vst [vmem:[#allocation2] sm:$0xff] %v133_v20  ;;  %293 = vst [vmem:[#allocation4] sm:$0xff] %v255_v21  ;;  %v148_v24 = vadd.f32 %v380_v22, %v333_v12  ;;  %v270_v25 = vadd.f32 %v396_v23, %v342_v13 }
  0xce   :  { %v142_v26 = vpop.f32.mrf.mxu0  ;;  %v264_v27 = vpop.f32.mrf.mxu1 }
  0xcf   :  { %174 = vst [vmem:[#allocation2 + $0x18] sm:$0xff] %v148_v24  ;;  %296 = vst [vmem:[#allocation4 + $0x18] sm:$0xff] %v270_v25  ;;  %v143_v28 = vadd.f32 %v333_v12, %v142_v26  ;;  %v265_v29 = vadd.f32 %v342_v13, %v264_v27 }
  0xd0   :  { %v383_v30 = vpop.f32.mrf.mxu0  ;;  %v399_v31 = vpop.f32.mrf.mxu1 }
  0xd1   :  { %173 = vst [vmem:[#allocation2 + $0x10] sm:$0xff] %v143_v28  ;;  %295 = vst [vmem:[#allocation4 + $0x10] sm:$0xff] %v265_v29  ;;  %v158_v32 = vadd.f32 %v383_v30, %v333_v12  ;;  %v280_v33 = vadd.f32 %v399_v31, %v342_v13 }
  0xd2   :  { %v152_v34 = vpop.f32.mrf.mxu0  ;;  %v274_v35 = vpop.f32.mrf.mxu1 }
  0xd3   :  { %176 = vst [vmem:[#allocation2 + $0x28] sm:$0xff] %v158_v32  ;;  %298 = vst [vmem:[#allocation4 + $0x28] sm:$0xff] %v280_v33  ;;  %v153_v36 = vadd.f32 %v333_v12, %v152_v34  ;;  %v275_v37 = vadd.f32 %v342_v13, %v274_v35 }
  0xd4   :  { %v386_v38 = vpop.f32.mrf.mxu0  ;;  %v402_v39 = vpop.f32.mrf.mxu1 }
  0xd5   :  { %175 = vst [vmem:[#allocation2 + $0x20] sm:$0xff] %v153_v36  ;;  %297 = vst [vmem:[#allocation4 + $0x20] sm:$0xff] %v275_v37  ;;  %v168_v40 = vadd.f32 %v386_v38, %v333_v12  ;;  %v290_v41 = vadd.f32 %v402_v39, %v342_v13 }
  0xd6   :  { %v162_v42 = vpop.f32.mrf.mxu0  ;;  %v284_v43 = vpop.f32.mrf.mxu1 }
  0xd7   :  { %178 = vst [vmem:[#allocation2 + $0x38] sm:$0xff] %v168_v40  ;;  %300 = vst [vmem:[#allocation4 + $0x38] sm:$0xff] %v290_v41  ;;  %v163_v44 = vadd.f32 %v333_v12, %v162_v42  ;;  %v285_v45 = vadd.f32 %v342_v13, %v284_v43 }
  0xd9   :  { %177 = vst [vmem:[#allocation2 + $0x30] sm:$0xff] %v163_v44  ;;  %299 = vst [vmem:[#allocation4 + $0x30] sm:$0xff] %v285_v45 }
  0xda   :  { %418 = shalt.err (!%p415_p4)
}
  0xdb   :  { %s453_s25 = smov 128   ;;  %s454_s26 = smov 8  }
  0xdc   :  { %312 = dma.vmem_to_hbm [thread:$0]  %s307_s2, 1024, %s559_s5, [#allocation3], %s453_s25, %s453_s25, %s454_s26  }
  0xdd   :  { %s427_s29 = scalar_lea.vmem %s319_s23, 1024  ;;  %p432_p6 = scmp.lt.s32.totalorder %s319_s23, %s319_s23 }
  0xde   :  { %p428_p5 = scmp.ne.s32.totalorder %s319_s23, %s427_s29  ;;  %p433_p7 = scmp.lt.s32.totalorder %s427_s29, %s427_s29 }
  0xe0   :  { %p434_p8 = por %p433_p7, %p432_p6 }
  0xe2   :  { %p435_p9 = pnand %p434_p8, %p428_p5 }
  0xe4   :  { %438 = shalt.err (!%p435_p9)
}
  0xe5   :  { %324 = dma.vmem_to_hbm [thread:$0]  %s319_s23, 1024, %s560_s6, [#allocation5], %s453_s25, %s453_s25, %s454_s26  }
  0xe6   :  { %447 = dma.done.wait [#allocation3], 1024  }
  0xe7   :  { %448 = vsyncadd [#allocation3], 4294966272 }
  0xe8   :  { %449 = dma.done.wait [#allocation5], 1024  }
  0xe9   :  { %450 = vsyncadd [#allocation5], 4294966272 }
  0xea   :  { %331 = vsyncpa [#allocation3], 1 }
  0xeb   :  { %332 = vsyncpa [#allocation5], 1 }

</bundles_post_ra>
